<compile_context>
chip_gen: v5e
topology: v5e:2x2
jax: 0.10.0
libtpu: 0.0.40
codegen_flags: <defaults>
</compile_context>

<pallas_src>
import functools

import jax
import jax.numpy as jnp
from jax import lax
from jax.experimental import pallas as pl
from jax.experimental.pallas import tpu as pltpu


def _cdiv(a, b):
    return -(-a // b)


def _round_up(a, b):
    return _cdiv(a, b) * b


def _vmem_budgets():
    """(vmem_limit_bytes, default block budget) chosen from the chip's VMEM size."""
    vmem = 64 * 1024 * 1024                       # conservative default (v7x-sized)
    try:
        info = pltpu.get_tpu_info()
        for attr in ("vmem_capacity_bytes", "vmem_size_bytes", "vmem_bytes"):
            v = getattr(info, attr, None)
            if v:
                vmem = int(v)
                break
    except Exception:
        pass
    if vmem >= 128 * 1024 * 1024:                 # v5e / v6e: 128 MiB physical VMEM
        return 100 * 1024 * 1024, 48 * 1024 * 1024
    return 48 * 1024 * 1024, 20 * 1024 * 1024     # v7x: 64 MiB physical per TC


def _row_granule(nc, itemsize):
    """Sublane-packing row granule: 8 rows f32, 16 bf16/fp16, 32 int8/fp8."""
    g = max(8, 32 // max(1, itemsize))
    while g > 8 and g > nc:                       # never make a block taller than the array
        g //= 2
    return max(8, g)


def _pick_row_tile(nc, hw, in_b, out_b, budget, granule):
    """Largest legal row tile whose working set fits `budget`.

    Per-row working set = double-buffered in+out blocks + fp32 upcast temp.
    Returns None if even a granule-row full-HW block exceeds the budget
    (caller tiles HW instead).  Preference: tile divides NC (no ragged last
    block) > even >=4 grid steps (v7x megacore balance) > biggest tile.
    """
    per_row = 2 * hw * (in_b + out_b) + 4 * hw
    tr_max = budget // per_row
    if tr_max < min(granule, nc):
        return None
    cap = min(tr_max, nc)
    cands = set(range(granule, (cap // granule) * granule + 1, granule))
    if nc <= cap:
        cands.add(nc)                             # full-dim block is always layout-legal
    if not cands:
        return None

    def steps(t):
        return _cdiv(nc, t)

    def rank(t):
        return (nc % t == 0, steps(t) >= 4 and steps(t) % 2 == 0, t)

    return max(cands, key=rank)


# ---------------------------------------------------------------------------
# Kernels
# ---------------------------------------------------------------------------

def _instnorm_fused_kernel(x_ref, wb_ref, o_ref, *, eps, hw):
    """One (TR, HW) tile: one-pass fp32 sum/sumsq stats, folded scale/shift."""
    x = x_ref[...].astype(jnp.float32)
    inv_n = 1.0 / float(hw)
    mean = jnp.sum(x, axis=-1, keepdims=True) * inv_n                       # (TR, 1)
    var = jnp.maximum(jnp.sum(x * x, axis=-1, keepdims=True) * inv_n
                      - mean * mean, 0.0)                                   # biased
    scale = wb_ref[:, 0:1] * lax.rsqrt(var + eps)                           # (TR, 1)
    shift = wb_ref[:, 1:2] - mean * scale                                   # (TR, 1)
    o_ref[...] = (x * scale + shift).astype(o_ref.dtype)


def _stats_kernel(x_ref, wb_ref, ss_ref, sum_acc, sq_acc, *, eps, hw):
    """Large-HW pass 1: accumulate sum / sumsq over HW tiles, finalize scale/shift."""
    j = pl.program_id(1)

    @pl.when(j == 0)
    def _():
        sum_acc[...] = jnp.zeros_like(sum_acc)
        sq_acc[...] = jnp.zeros_like(sq_acc)

    x = x_ref[...].astype(jnp.float32)
    thw = x.shape[-1]
    if hw % thw != 0:
        # Mask out-of-bounds columns of the (partial) last HW tile.
        col = j * thw + lax.broadcasted_iota(jnp.int32, x.shape, 1)
        x = jnp.where(col < hw, x, 0.0)
    sum_acc[...] += jnp.sum(x, axis=-1, keepdims=True)
    sq_acc[...] += jnp.sum(x * x, axis=-1, keepdims=True)

    @pl.when(j == pl.num_programs(1) - 1)
    def _():
        inv_n = 1.0 / float(hw)
        mean = sum_acc[...] * inv_n
        var = jnp.maximum(sq_acc[...] * inv_n - mean * mean, 0.0)
        scale = wb_ref[:, 0:1] * lax.rsqrt(var + eps)
        shift = wb_ref[:, 1:2] - mean * scale
        ss_ref[...] = jnp.concatenate([scale, shift], axis=-1)


def _apply_kernel(x_ref, ss_ref, o_ref):
    """Large-HW pass 2: y = x * scale + shift, native-dtype store."""
    x = x_ref[...].astype(jnp.float32)
    o_ref[...] = (x * ss_ref[:, 0:1] + ss_ref[:, 1:2]).astype(o_ref.dtype)


# ---------------------------------------------------------------------------
# Wrapper
# ---------------------------------------------------------------------------

def distributed_instance_norm_2d(x, weight=None, bias=None, eps=1e-5,
                                 max_block_bytes=None):
    """x: (N, C, H, W) float dtype. weight/bias: (C,) or None (affine=False)."""
    N, C, H, W = x.shape
    dtype = x.dtype
    NC, HW = N * C, H * W
    in_b = jnp.dtype(dtype).itemsize
    out_b = in_b

    vmem_limit, default_budget = _vmem_budgets()
    budget = default_budget if max_block_bytes is None else int(max_block_bytes)

    # Metadata-only reshape to per-instance rows in the native dtype.
    x2 = x.reshape(NC, HW)

    # Per-row fp32 affine params fused into one narrow (rows, 2) side input.
    w_c = jnp.ones((C,), jnp.float32) if weight is None else weight.astype(jnp.float32)
    b_c = jnp.zeros((C,), jnp.float32) if bias is None else bias.astype(jnp.float32)
    wb = jnp.stack([jnp.tile(w_c, (N,)), jnp.tile(b_c, (N,))], axis=-1)    # (NC, 2)

    granule = _row_granule(NC, in_b)
    TR = _pick_row_tile(NC, HW, in_b, out_b, budget, granule)

    if TR is not None:
        # Fast path: one (TR, HW) block holds full rows -> single fused pass.
        grid_rows = _cdiv(NC, TR)
        rows_pad = grid_rows * TR
        if rows_pad != NC:                       # only the tiny param array is padded
            wb = jnp.pad(wb, ((0, rows_pad - NC), (0, 0)))
        out = pl.pallas_call(
            functools.partial(_instnorm_fused_kernel, eps=float(eps), hw=HW),
            out_shape=jax.ShapeDtypeStruct((NC, HW), dtype),
            grid_spec=pltpu.PrefetchScalarGridSpec(
                num_scalar_prefetch=0,
                grid=(grid_rows,),
                in_specs=[pl.BlockSpec((TR, HW), lambda i: (i, 0)),
                          pl.BlockSpec((TR, 2), lambda i: (i, 0))],
                out_specs=pl.BlockSpec((TR, HW), lambda i: (i, 0))),
            compiler_params=pltpu.CompilerParams(
                dimension_semantics=("parallel",),
                vmem_limit_bytes=vmem_limit),
            cost_estimate=pl.CostEstimate(
                flops=int(5 * NC * HW),
                transcendentals=int(NC),
                bytes_accessed=int(NC * HW * (in_b + out_b))),
        )(x2, wb)
    else:
        # Large-HW fallback: tile HW. Pass 1 accumulates per-row sum/sumsq and
        # finalizes fp32 scale/shift; pass 2 re-reads x and applies them.
        # TODO(synk): a Welford / per-tile-shifted merge would be more robust to
        # E[x^2]-E[x]^2 cancellation when |mean| >> std.
        TR = granule if NC >= granule else NC
        grid_rows = _cdiv(NC, TR)
        rows_pad = grid_rows * TR
        if rows_pad != NC:
            wb = jnp.pad(wb, ((0, rows_pad - NC), (0, 0)))

        hw_pad = _round_up(HW, 128)
        # Stats pass only streams x (its outputs are two fp32 columns): size its
        # HW tile from the double-buffered input block + fp32 upcast temp alone.
        thw_s = max(128, (budget // (2 * TR * in_b + 4 * TR)) // 128 * 128)
        thw_s = min(thw_s, hw_pad)
        nhw_s = _cdiv(HW, thw_s)
        # Apply pass streams x in and y out.
        thw_a = max(128, (budget // (2 * TR * (in_b + out_b) + 4 * TR)) // 128 * 128)
        thw_a = min(thw_a, hw_pad)
        nhw_a = _cdiv(HW, thw_a)

        scale_shift = pl.pallas_call(
            functools.partial(_stats_kernel, eps=float(eps), hw=HW),
            out_shape=jax.ShapeDtypeStruct((rows_pad, 2), jnp.float32),
            grid_spec=pltpu.PrefetchScalarGridSpec(
                num_scalar_prefetch=0,
                grid=(grid_rows, nhw_s),
                in_specs=[pl.BlockSpec((TR, thw_s), lambda i, j: (i, j)),
                          pl.BlockSpec((TR, 2), lambda i, j: (i, 0))],
                out_specs=pl.BlockSpec((TR, 2), lambda i, j: (i, 0)),
                scratch_shapes=[pltpu.VMEM((TR, 1), jnp.float32),
                                pltpu.VMEM((TR, 1), jnp.float32)]),
            compiler_params=pltpu.CompilerParams(
                dimension_semantics=("parallel", "arbitrary"),
                vmem_limit_bytes=vmem_limit),
            cost_estimate=pl.CostEstimate(
                flops=int(3 * NC * HW),
                transcendentals=int(NC),
                bytes_accessed=int(NC * HW * in_b)),
        )(x2, wb)

        out = pl.pallas_call(
            _apply_kernel,
            out_shape=jax.ShapeDtypeStruct((NC, HW), dtype),
            grid_spec=pltpu.PrefetchScalarGridSpec(
                num_scalar_prefetch=0,
                grid=(grid_rows, nhw_a),
                in_specs=[pl.BlockSpec((TR, thw_a), lambda i, j: (i, j)),
                          pl.BlockSpec((TR, 2), lambda i, j: (i, 0))],
                out_specs=pl.BlockSpec((TR, thw_a), lambda i, j: (i, j))),
            compiler_params=pltpu.CompilerParams(
                dimension_semantics=("parallel", "parallel"),
                vmem_limit_bytes=vmem_limit),
            cost_estimate=pl.CostEstimate(
                flops=int(2 * NC * HW),
                transcendentals=0,
                bytes_accessed=int(NC * HW * (in_b + out_b))),
        )(x2, scale_shift)

    # TODO(synk): multi-rank Welford merge over the 'spatial' comm group
    # (remote DMA of per-rank mean/var/count) not implemented; this is the
    # single-rank (comm size == 1) forward, which matches the reference math.
    # TODO(synk): for small / non-128-multiple HW a lane-dense layout (rows on
    # lanes, reduce over sublanes) would avoid masked partial vregs.
    return out.reshape(N, C, H, W)


# ---------------------------------------------------------------------------
# Reference + test
# ---------------------------------------------------------------------------

def _reference(x, weight, bias, eps=1e-5):
    xf = x.astype(jnp.float32)
    mean = jnp.mean(xf, axis=(-2, -1), keepdims=True)
    var = jnp.mean((xf - mean) ** 2, axis=(-2, -1), keepdims=True)
    y = (xf - mean) / jnp.sqrt(var + eps)
    if weight is not None:
        y = weight.reshape(1, -1, 1, 1) * y + bias.reshape(1, -1, 1, 1)
    return y.astype(x.dtype)


if __name__ == "__main__":
    key = jax.random.PRNGKey(0)
    N, C, H, W = 2, 4, 16, 16
    x = jax.random.normal(key, (N, C, H, W), dtype=jnp.float32)

    # Deterministic affine params (module __init__: weight=ones(C), bias=zeros(C);
    # perturbed deterministically here so the affine path is exercised).
    weight = 1.0 + 0.1 * jnp.arange(C, dtype=jnp.float32)
    bias = 0.01 * jnp.arange(C, dtype=jnp.float32)

    y_ref = _reference(x, weight, bias, eps=1e-5)

    # Fast path (full-HW blocks, fused one-pass kernel).
    y = jax.block_until_ready(distributed_instance_norm_2d(x, weight, bias, eps=1e-5))
    assert y.shape == (N, C, H, W) and y.dtype == x.dtype
    assert jnp.allclose(y, y_ref, atol=1e-5, rtol=1e-5)

    # Large-HW fallback path, forced via a tiny block budget (HW is tiled 2x here).
    y2 = jax.block_until_ready(
        distributed_instance_norm_2d(x, weight, bias, eps=1e-5, max_block_bytes=16 * 1024))
    assert jnp.allclose(y2, y_ref, atol=1e-4, rtol=1e-4)

    # bf16 input exercises the native-dtype in/out plumbing (affine=False branch).
    xb = x.astype(jnp.bfloat16)
    yb = jax.block_until_ready(distributed_instance_norm_2d(xb, None, None, eps=1e-5))
    assert yb.dtype == jnp.bfloat16
    yb_ref = _reference(xb, None, None, eps=1e-5)
    assert jnp.allclose(yb.astype(jnp.float32), yb_ref.astype(jnp.float32),
                        atol=5e-2, rtol=5e-2)

    print("KERNEL_OK")
</pallas_src>

<mosaic_0001>
module attributes {stable_mosaic.version = 11 : i64} {
  func.func @_instnorm_fused_kernel(%arg0: i32, %arg1: memref<8x256xf32, #tpu.memory_space<vmem>>, %arg2: memref<8x2xf32, #tpu.memory_space<vmem>>, %arg3: memref<8x256xf32, #tpu.memory_space<vmem>>) attributes {dimension_semantics = [#tpu.dimension_semantics<parallel>], iteration_bounds = array<i64: 1>, scalar_prefetch = 0 : i64, scratch_operands = 0 : i64, tpu.core_type = #tpu.core_type<tc>, window_params = [{transform_indices = @transform_0, window_bounds = array<i64: 8, 256>}, {transform_indices = @transform_1, window_bounds = array<i64: 8, 2>}, {transform_indices = @transform_2, window_bounds = array<i64: 8, 256>}]} {
    %c0 = arith.constant 0 : index
    %c0_0 = arith.constant 0 : index
    %0 = vector.load %arg1[%c0, %c0_0] : memref<8x256xf32, #tpu.memory_space<vmem>>, vector<8x256xf32>
    %cst = arith.constant dense<0.000000e+00> : vector<8xf32>
    %1 = vector.multi_reduction <add>, %0, %cst [1] : vector<8x256xf32> to vector<8xf32>
    %2 = vector.shape_cast %1 : vector<8xf32> to vector<8x1xf32>
    %cst_1 = arith.constant 3.906250e-03 : f32
    %3 = vector.broadcast %cst_1 : f32 to vector<8x1xf32>
    %4 = arith.mulf %2, %3 : vector<8x1xf32>
    %5 = arith.mulf %0, %0 : vector<8x256xf32>
    %cst_2 = arith.constant dense<0.000000e+00> : vector<8xf32>
    %6 = vector.multi_reduction <add>, %5, %cst_2 [1] : vector<8x256xf32> to vector<8xf32>
    %7 = vector.shape_cast %6 : vector<8xf32> to vector<8x1xf32>
    %cst_3 = arith.constant 3.906250e-03 : f32
    %8 = vector.broadcast %cst_3 : f32 to vector<8x1xf32>
    %9 = arith.mulf %7, %8 : vector<8x1xf32>
    %10 = arith.mulf %4, %4 : vector<8x1xf32>
    %11 = arith.subf %9, %10 : vector<8x1xf32>
    %cst_4 = arith.constant 0.000000e+00 : f32
    %12 = vector.broadcast %cst_4 : f32 to vector<8x1xf32>
    %13 = arith.maximumf %11, %12 : vector<8x1xf32>
    %c0_5 = arith.constant 0 : index
    %c0_6 = arith.constant 0 : index
    %14 = vector.load %arg2[%c0_5, %c0_6] : memref<8x2xf32, #tpu.memory_space<vmem>>, vector<8x1xf32>
    %cst_7 = arith.constant 9.99999974E-6 : f32
    %15 = vector.broadcast %cst_7 : f32 to vector<8x1xf32>
    %16 = arith.addf %13, %15 : vector<8x1xf32>
    %17 = math.rsqrt %16 : vector<8x1xf32>
    %18 = arith.mulf %14, %17 : vector<8x1xf32>
    %c0_8 = arith.constant 0 : index
    %c1 = arith.constant 1 : index
    %19 = vector.load %arg2[%c0_8, %c1] : memref<8x2xf32, #tpu.memory_space<vmem>>, vector<8x1xf32>
    %20 = arith.mulf %4, %18 : vector<8x1xf32>
    %21 = arith.subf %19, %20 : vector<8x1xf32>
    %22 = vector.broadcast %18 : vector<8x1xf32> to vector<8x256xf32>
    %23 = arith.mulf %0, %22 : vector<8x256xf32>
    %24 = vector.broadcast %21 : vector<8x1xf32> to vector<8x256xf32>
    %25 = arith.addf %23, %24 : vector<8x256xf32>
    %c0_9 = arith.constant 0 : index
    %c0_10 = arith.constant 0 : index
    %26 = vector.load %arg3[%c0_9, %c0_10] : memref<8x256xf32, #tpu.memory_space<vmem>>, vector<8x256xf32>
    tpu.vector_store %arg3[%c0_9, %c0_10], %25 {strides = array<i32>} : memref<8x256xf32, #tpu.memory_space<vmem>>, vector<8x256xf32>,
    return
  }
  func.func @transform_0(%arg0: i32) -> (i32, i32) {
    %c0_i32 = arith.constant 0 : i32
    %c0_i32_0 = arith.constant 0 : i32
    return %arg0, %c0_i32 : i32, i32
  }
  func.func @transform_1(%arg0: i32) -> (i32, i32) {
    %c0_i32 = arith.constant 0 : i32
    %c0_i32_0 = arith.constant 0 : i32
    return %arg0, %c0_i32 : i32, i32
  }
  func.func @transform_2(%arg0: i32) -> (i32, i32) {
    %c0_i32 = arith.constant 0 : i32
    %c0_i32_0 = arith.constant 0 : i32
    return %arg0, %c0_i32 : i32, i32
  }
}

</mosaic_0001>

<bundles_post_ra>
// kernel: tpu_custom_call.1
= control target key start
LH: loop header
LB: loop body
LE: loop exit
PB: predicated region body
PF: predicated region fallthrough
CT: control target
= control target key end

     0   :  { %7 = vsyncpa [#allocation3], 0  ;;  %s184_s0 = inlined_call_operand.hbm [shape: f32[8,256], index: 0, kind: input, shape index: {}]   ;;  %s185_s1 = inlined_call_operand.vmem [shape: f32[8,2], index: 1, kind: input, shape index: {}]   ;;  %s186_s2 = inlined_call_operand.hbm [shape: f32[8,256], index: 2, kind: output, shape index: {}]  }
   0x1   :  { %8 = vsyncpa [#allocation4], 0  ;;  %s14_s11 = sshll.u32 %s184_s0, 4  ;;  %s155_s12 = smov [#allocation2]   ;;  %s15_s11 = int_to_ptr.hbm [resolvable:$true] %s14_s11 }
   0x2   :  { %s16_s13 = sshll.u32 %s155_s12, 4  ;;  %s17_s13 = int_to_ptr.vmem [resolvable:$true] %s16_s13 }
   0x3   :  { %19 = dma.hbm_to_vmem [thread:$0]  %s15_s11, 256, %s17_s13, [#allocation3]  }
   0x4   :  { %151 = dma.done.wait [#allocation3], 256  }
   0x5   :  { %152 = vsyncadd [#allocation3], 4294967040  ;;  %v26_v0 = vld [vmem:[#allocation2] sm:$0xff]  ;;  %v27_v1 = vld [vmem:[#allocation2 + $0x8] sm:$0xff]  ;;  %v156_v9 = vmov 0   ;;  %s157_s15 = smov 1  }
   0x6   :  { %v28_v2 = vadd.f32 %v27_v1, %v26_v0  ;;  %v32_v3 = vmul.f32 %v26_v0, %v26_v0  ;;  %v33_v4 = vmul.f32 %v27_v1, %v27_v1  ;;  %98 = vset.pattern.permute.xlu1 %v156_v9  ;;  %v41_v20 = vld [vmem:[%s185_s1] sm:$0xff]  ;;  %v158_v25 = vmov 1   ;;  %s159_s16 = smov [#allocation5]   ;;  %s83_s19 = sshll.u32 %s186_s2, 4  ;;  %s84_s19 = int_to_ptr.hbm [resolvable:$true] %s83_s19 }
   0x7   :  { %99 = vset.pattern.permute.xlu2 %v158_v25  ;;  %100 = vset.pattern.permute.xlu0 %v158_v25  ;;  %s81_s17 = sshll.u32 %s159_s16, 4  ;;  %s82_s17 = int_to_ptr.vmem [resolvable:$true] %s81_s17 }
   0x8   :  { %29 = vadd.xlane.f32.xlu0 %v28_v2  ;;  %v34_v5 = vadd.f32 %v33_v4, %v32_v3 }
  0x10   :  { %35 = vadd.xlane.f32.xlu0 %v34_v5 }
  0x7b   :  { %v30_v6 = vpop.xlane.xlu0 %29 }
  0x7c   :  { %v31_v7 = vmul.f32 0.00390625, %v30_v6 }
  0x7e   :  { %v38_v10 = vmul.f32 %v31_v7, %v31_v7 }
  0x83   :  { %v36_v8 = vpop.xlane.xlu0 %35 }
  0x84   :  { %v37_v11 = vmul.f32 0.00390625, %v36_v8 }
  0x86   :  { %v39_v12 = vsub.f32 %v37_v11, %v38_v10 }
  0x88   :  { %v40_v13 = vmax.f32 %v39_v12, 0.0 }
  0x8a   :  { %v42_v14 = vadd.f32 1e-05, %v40_v13 }
  0x8c   :  { %101 = vrsqrt.f32 %v42_v14  ;;  %vm49_vm1 = vweird.f32 %v42_v14 }
  0x92   :  { %v102_v15 = vpop.eup %101 }
  0x93   :  { %v44_v16 = vmul.f32 %v102_v15, %v42_v14  ;;  %vm50_vm0 = vweird.f32 %v102_v15 }
  0x94   :  { %vm51_vm2 = vmor %vm49_vm1, %vm50_vm0 }
  0x95   :  { %v45_v17 = vmul.f32 %v102_v15, %v44_v16 }
  0x97   :  { %v46_v18 = vmul.f32 0.5, %v45_v17 }
  0x99   :  { %v47_v19 = vsub.f32 1.5, %v46_v18 }
  0x9b   :  { %v48_v21 = vmul.f32 %v102_v15, %v47_v19 }
  0x9d   :  { %v52_v22 = vsel %vm51_vm2, %v102_v15, %v48_v21 }
  0x9e   :  { %v53_v23 = vmul.f32 %v52_v22, %v41_v20 }
  0xa0   :  { %v54_v24 = vmul.f32 %v53_v23, %v31_v7 }
  0xa2   :  { %56 = vrot.lane.b32.xlu1 %v54_v24, %s157_s15 }
  0xaa   :  { %62 = vperm.xlu1 %98, %v53_v23  }
 0x114   :  { %v57_v26 = vpop.permute.xlu1 %56 }
 0x115   :  { %v59_v27 = vsub.f32 %v41_v20, %v57_v26 }
 0x117   :  { %69 = vperm.xlu2 %99, %v59_v27  }
 0x11c   :  { %v63_v28 = vpop.permute.xlu1 %62 }
 0x11d   :  { %v65_v29 = vmul.f32 %v63_v28, %v26_v0  ;;  %v66_v30 = vmul.f32 %v63_v28, %v27_v1 }
 0x171   :  { %v70_v31 = vpop.permute.xlu2 %69 }
 0x172   :  { %v72_v32 = vadd.f32 %v70_v31, %v65_v29  ;;  %v73_v33 = vadd.f32 %v70_v31, %v66_v30 }
 0x174   :  { %74 = vst [vmem:[#allocation5] sm:$0xff] %v72_v32 }
 0x175   :  { %75 = vst [vmem:[#allocation5 + $0x8] sm:$0xff] %v73_v33 }
 0x176   :  { %86 = dma.vmem_to_hbm [thread:$0]  %s82_s17, 256, %s84_s19, [#allocation4]  }
 0x177   :  { %153 = dma.done.wait [#allocation4], 256  }
 0x178   :  { %154 = vsyncadd [#allocation4], 4294967040 }
 0x179   :  { %91 = vsyncpa [#allocation3], 1 }
 0x17a   :  { %92 = vsyncpa [#allocation4], 1 }

</bundles_post_ra>
